<compile_context>
chip_gen: v7x
topology: tpu7x:2x2x1
jax: 0.10.0
libtpu: 0.0.40
codegen_flags: <defaults>
</compile_context>

<pallas_src>
import functools

import jax
import jax.numpy as jnp
from jax.experimental import pallas as pl
from jax.experimental.pallas import tpu as pltpu


def _make_embed_kernel(S: int, V: int, D: int):
    """Build a gather kernel for one batch row of S tokens."""

    def kernel(ids_ref, word_hbm, pos_ref, out_ref, wrow_vmem, sems):
        # ids_ref:   (B, S) int32 in SMEM (scalar prefetch)
        # word_hbm:  (V, D) word table, left in HBM (memory_space=pl.ANY)
        # pos_ref:   (MAX_SEQ, D) positional table, VMEM resident
        # out_ref:   (1, S, D) output block for batch row b
        # wrow_vmem: (S, D) VMEM scratch holding the gathered word rows
        # sems:      (S,) DMA semaphores
        b = pl.program_id(0)

        # Issue all S row-gather DMAs up front (HBM -> VMEM), one row each.
        for t in range(S):
            tok = ids_ref[b, t]
            # Clamp to a valid row: avoids an OOB HBM DMA for bad ids.
            # TODO(synk): PyTorch nn.Embedding raises on out-of-range ids;
            # here we clamp instead (no clean in-kernel "raise" equivalent).
            tok = jnp.minimum(jnp.maximum(tok, 0), V - 1)
            pltpu.make_async_copy(
                word_hbm.at[pl.ds(tok, 1), :],
                wrow_vmem.at[pl.ds(t, 1), :],
                sems.at[t],
            ).start()

        # Wait for all gathered rows.
        for t in range(S):
            pltpu.make_async_copy(
                word_hbm.at[pl.ds(0, 1), :],
                wrow_vmem.at[pl.ds(t, 1), :],
                sems.at[t],
            ).wait()

        # word + learned positional rows, accumulated in f32, one dense store.
        word_f32 = wrow_vmem[...].astype(jnp.float32)
        pos_f32 = pos_ref[0:S, :].astype(jnp.float32)
        out_ref[0] = (word_f32 + pos_f32).astype(out_ref.dtype)

    return kernel


@functools.partial(jax.jit, static_argnames=())
def learned_pos_word_embedding(input_ids, word_table, pos_table):
    """input_ids: (B, S) int32; word_table: (V, D); pos_table: (MAX_SEQ, D)."""
    B, S = input_ids.shape
    V, D = word_table.shape
    MAX_SEQ = pos_table.shape[0]

    out_dtype = jnp.float32  # matches PyTorch (f32 embedding tables -> f32 out)

    kernel = _make_embed_kernel(S, V, D)

    word_bytes = int(word_table.dtype.itemsize)
    pos_bytes = int(pos_table.dtype.itemsize)
    bytes_accessed = (
        B * S * D * word_bytes          # gathered word rows
        + MAX_SEQ * D * pos_bytes       # positional table
        + B * S * 4                     # token ids
        + B * S * D * 4                 # output
    )

    grid_spec = pltpu.PrefetchScalarGridSpec(
        num_scalar_prefetch=1,          # input_ids -> SMEM
        grid=(B,),
        in_specs=[
            # Word table stays in HBM; rows are DMA-gathered in the kernel.
            pl.BlockSpec(memory_space=pl.ANY),
            # Full positional table resident in VMEM (tiny), constant index.
            pl.BlockSpec((MAX_SEQ, D), lambda b, ids: (0, 0)),
        ],
        out_specs=pl.BlockSpec((1, S, D), lambda b, ids: (b, 0, 0)),
        scratch_shapes=[
            pltpu.VMEM((S, D), word_table.dtype),
            pltpu.SemaphoreType.DMA((S,)),
        ],
    )

    return pl.pallas_call(
        kernel,
        out_shape=jax.ShapeDtypeStruct((B, S, D), out_dtype),
        grid_spec=grid_spec,
        compiler_params=pltpu.CompilerParams(
            dimension_semantics=("parallel",),
            vmem_limit_bytes=32 * 1024 * 1024,
        ),
        cost_estimate=pl.CostEstimate(
            flops=B * S * D,            # the add
            transcendentals=0,
            bytes_accessed=int(bytes_accessed),
        ),
    )(input_ids.astype(jnp.int32), word_table, pos_table)


if __name__ == "__main__":
    # Module hyperparameters (small, consistent with the forward pass).
    VOCAB_SIZE = 64
    WORD_DIM = 128
    MAX_SEQ_LEN = 16
    B, S = 2, 8

    key = jax.random.PRNGKey(0)
    k_ids, k_word, k_pos = jax.random.split(key, 3)

    # Deterministic synthetic parameters (stand-in for nn.Embedding weights).
    # (bf16 tables also work; accumulation inside the kernel is f32.)
    word_table = jax.random.normal(k_word, (VOCAB_SIZE, WORD_DIM), jnp.float32)
    pos_table = jax.random.normal(k_pos, (MAX_SEQ_LEN, WORD_DIM), jnp.float32)

    input_ids = jax.random.randint(k_ids, (B, S), 0, VOCAB_SIZE, dtype=jnp.int32)

    out = learned_pos_word_embedding(input_ids, word_table, pos_table)
    out = jax.block_until_ready(out)

    # Pure-JAX reference for a sanity check.
    ref = word_table[input_ids] + pos_table[jnp.arange(S)][None, :, :]
    assert out.shape == (B, S, WORD_DIM)
    assert jnp.allclose(out, ref, atol=1e-5), "mismatch vs reference"

    print("KERNEL_OK")
</pallas_src>

<mosaic_0001>
module attributes {stable_mosaic.version = 11 : i64} {
  func.func @kernel(%arg0: i32, %arg1: memref<2x8xi32, #tpu.memory_space<smem>>, %arg2: memref<64x128xf32, #tpu.memory_space<any>>, %arg3: memref<16x128xf32, #tpu.memory_space<vmem>>, %arg4: memref<1x8x128xf32, #tpu.memory_space<vmem>>, %arg5: memref<8x128xf32, #tpu.memory_space<vmem>>, %arg6: memref<8x!tpu.dma_semaphore, #tpu.memory_space<semaphore_mem>>) attributes {dimension_semantics = [#tpu.dimension_semantics<parallel>], iteration_bounds = array<i64: 2>, scalar_prefetch = 1 : i64, scratch_operands = 2 : i64, tpu.core_type = #tpu.core_type<tc>, window_params = [{}, {pipeline_mode = #tpu.pipeline_mode<synchronous>, transform_indices = @transform_1, window_bounds = array<i64: 16, 128>}, {transform_indices = @transform_2, window_bounds = array<i64: 1, 8, 128>}]} {
    %0 = arith.index_cast %arg0 : i32 to index
    %c0 = arith.constant 0 : index
    %1 = memref.load %arg1[%0, %c0] : memref<2x8xi32, #tpu.memory_space<smem>>
    %c0_i32 = arith.constant 0 : i32
    %2 = arith.maxsi %1, %c0_i32 : i32
    %c63_i32 = arith.constant 63 : i32
    %3 = arith.minsi %2, %c63_i32 : i32
    %c0_i32_0 = arith.constant 0 : i32
    %c0_i32_1 = arith.constant 0 : i32
    %4 = tpu.memref_slice %arg2[%3, %c0_i32_1] : memref<64x128xf32, #tpu.memory_space<any>> -> memref<1x128xf32, #tpu.memory_space<any>>
    %c0_i32_2 = arith.constant 0 : i32
    %c0_i32_3 = arith.constant 0 : i32
    %5 = tpu.memref_slice %arg5[%c0_i32_2, %c0_i32_3] : memref<8x128xf32, #tpu.memory_space<vmem>> -> memref<1x128xf32, #tpu.memory_space<vmem>>
    %6 = tpu.memref_slice %arg6[%c0_i32_0] : memref<8x!tpu.dma_semaphore, #tpu.memory_space<semaphore_mem>> -> memref<1x!tpu.dma_semaphore, #tpu.memory_space<semaphore_mem>>
    %7 = tpu.memref_squeeze %6 : memref<1x!tpu.dma_semaphore, #tpu.memory_space<semaphore_mem>> -> memref<!tpu.dma_semaphore, #tpu.memory_space<semaphore_mem>>
    tpu.enqueue_dma source(%4 : memref<1x128xf32, #tpu.memory_space<any>>) target(%5 : memref<1x128xf32, #tpu.memory_space<vmem>>) target_semaphore(%7 : memref<!tpu.dma_semaphore, #tpu.memory_space<semaphore_mem>>)
    %8 = arith.index_cast %arg0 : i32 to index
    %c1 = arith.constant 1 : index
    %9 = memref.load %arg1[%8, %c1] : memref<2x8xi32, #tpu.memory_space<smem>>
    %c0_i32_4 = arith.constant 0 : i32
    %10 = arith.maxsi %9, %c0_i32_4 : i32
    %c63_i32_5 = arith.constant 63 : i32
    %11 = arith.minsi %10, %c63_i32_5 : i32
    %c1_i32 = arith.constant 1 : i32
    %c0_i32_6 = arith.constant 0 : i32
    %12 = tpu.memref_slice %arg2[%11, %c0_i32_6] : memref<64x128xf32, #tpu.memory_space<any>> -> memref<1x128xf32, #tpu.memory_space<any>>
    %c1_i32_7 = arith.constant 1 : i32
    %c0_i32_8 = arith.constant 0 : i32
    %13 = tpu.memref_slice %arg5[%c1_i32_7, %c0_i32_8] : memref<8x128xf32, #tpu.memory_space<vmem>> -> memref<1x128xf32, #tpu.memory_space<vmem>>
    %14 = tpu.memref_slice %arg6[%c1_i32] : memref<8x!tpu.dma_semaphore, #tpu.memory_space<semaphore_mem>> -> memref<1x!tpu.dma_semaphore, #tpu.memory_space<semaphore_mem>>
    %15 = tpu.memref_squeeze %14 : memref<1x!tpu.dma_semaphore, #tpu.memory_space<semaphore_mem>> -> memref<!tpu.dma_semaphore, #tpu.memory_space<semaphore_mem>>
    tpu.enqueue_dma source(%12 : memref<1x128xf32, #tpu.memory_space<any>>) target(%13 : memref<1x128xf32, #tpu.memory_space<vmem>>) target_semaphore(%15 : memref<!tpu.dma_semaphore, #tpu.memory_space<semaphore_mem>>)
    %16 = arith.index_cast %arg0 : i32 to index
    %c2 = arith.constant 2 : index
    %17 = memref.load %arg1[%16, %c2] : memref<2x8xi32, #tpu.memory_space<smem>>
    %c0_i32_9 = arith.constant 0 : i32
    %18 = arith.maxsi %17, %c0_i32_9 : i32
    %c63_i32_10 = arith.constant 63 : i32
    %19 = arith.minsi %18, %c63_i32_10 : i32
    %c2_i32 = arith.constant 2 : i32
    %c0_i32_11 = arith.constant 0 : i32
    %20 = tpu.memref_slice %arg2[%19, %c0_i32_11] : memref<64x128xf32, #tpu.memory_space<any>> -> memref<1x128xf32, #tpu.memory_space<any>>
    %c2_i32_12 = arith.constant 2 : i32
    %c0_i32_13 = arith.constant 0 : i32
    %21 = tpu.memref_slice %arg5[%c2_i32_12, %c0_i32_13] : memref<8x128xf32, #tpu.memory_space<vmem>> -> memref<1x128xf32, #tpu.memory_space<vmem>>
    %22 = tpu.memref_slice %arg6[%c2_i32] : memref<8x!tpu.dma_semaphore, #tpu.memory_space<semaphore_mem>> -> memref<1x!tpu.dma_semaphore, #tpu.memory_space<semaphore_mem>>
    %23 = tpu.memref_squeeze %22 : memref<1x!tpu.dma_semaphore, #tpu.memory_space<semaphore_mem>> -> memref<!tpu.dma_semaphore, #tpu.memory_space<semaphore_mem>>
    tpu.enqueue_dma source(%20 : memref<1x128xf32, #tpu.memory_space<any>>) target(%21 : memref<1x128xf32, #tpu.memory_space<vmem>>) target_semaphore(%23 : memref<!tpu.dma_semaphore, #tpu.memory_space<semaphore_mem>>)
    %24 = arith.index_cast %arg0 : i32 to index
    %c3 = arith.constant 3 : index
    %25 = memref.load %arg1[%24, %c3] : memref<2x8xi32, #tpu.memory_space<smem>>
    %c0_i32_14 = arith.constant 0 : i32
    %26 = arith.maxsi %25, %c0_i32_14 : i32
    %c63_i32_15 = arith.constant 63 : i32
    %27 = arith.minsi %26, %c63_i32_15 : i32
    %c3_i32 = arith.constant 3 : i32
    %c0_i32_16 = arith.constant 0 : i32
    %28 = tpu.memref_slice %arg2[%27, %c0_i32_16] : memref<64x128xf32, #tpu.memory_space<any>> -> memref<1x128xf32, #tpu.memory_space<any>>
    %c3_i32_17 = arith.constant 3 : i32
    %c0_i32_18 = arith.constant 0 : i32
    %29 = tpu.memref_slice %arg5[%c3_i32_17, %c0_i32_18] : memref<8x128xf32, #tpu.memory_space<vmem>> -> memref<1x128xf32, #tpu.memory_space<vmem>>
    %30 = tpu.memref_slice %arg6[%c3_i32] : memref<8x!tpu.dma_semaphore, #tpu.memory_space<semaphore_mem>> -> memref<1x!tpu.dma_semaphore, #tpu.memory_space<semaphore_mem>>
    %31 = tpu.memref_squeeze %30 : memref<1x!tpu.dma_semaphore, #tpu.memory_space<semaphore_mem>> -> memref<!tpu.dma_semaphore, #tpu.memory_space<semaphore_mem>>
    tpu.enqueue_dma source(%28 : memref<1x128xf32, #tpu.memory_space<any>>) target(%29 : memref<1x128xf32, #tpu.memory_space<vmem>>) target_semaphore(%31 : memref<!tpu.dma_semaphore, #tpu.memory_space<semaphore_mem>>)
    %32 = arith.index_cast %arg0 : i32 to index
    %c4 = arith.constant 4 : index
    %33 = memref.load %arg1[%32, %c4] : memref<2x8xi32, #tpu.memory_space<smem>>
    %c0_i32_19 = arith.constant 0 : i32
    %34 = arith.maxsi %33, %c0_i32_19 : i32
    %c63_i32_20 = arith.constant 63 : i32
    %35 = arith.minsi %34, %c63_i32_20 : i32
    %c4_i32 = arith.constant 4 : i32
    %c0_i32_21 = arith.constant 0 : i32
    %36 = tpu.memref_slice %arg2[%35, %c0_i32_21] : memref<64x128xf32, #tpu.memory_space<any>> -> memref<1x128xf32, #tpu.memory_space<any>>
    %c4_i32_22 = arith.constant 4 : i32
    %c0_i32_23 = arith.constant 0 : i32
    %37 = tpu.memref_slice %arg5[%c4_i32_22, %c0_i32_23] : memref<8x128xf32, #tpu.memory_space<vmem>> -> memref<1x128xf32, #tpu.memory_space<vmem>>
    %38 = tpu.memref_slice %arg6[%c4_i32] : memref<8x!tpu.dma_semaphore, #tpu.memory_space<semaphore_mem>> -> memref<1x!tpu.dma_semaphore, #tpu.memory_space<semaphore_mem>>
    %39 = tpu.memref_squeeze %38 : memref<1x!tpu.dma_semaphore, #tpu.memory_space<semaphore_mem>> -> memref<!tpu.dma_semaphore, #tpu.memory_space<semaphore_mem>>
    tpu.enqueue_dma source(%36 : memref<1x128xf32, #tpu.memory_space<any>>) target(%37 : memref<1x128xf32, #tpu.memory_space<vmem>>) target_semaphore(%39 : memref<!tpu.dma_semaphore, #tpu.memory_space<semaphore_mem>>)
    %40 = arith.index_cast %arg0 : i32 to index
    %c5 = arith.constant 5 : index
    %41 = memref.load %arg1[%40, %c5] : memref<2x8xi32, #tpu.memory_space<smem>>
    %c0_i32_24 = arith.constant 0 : i32
    %42 = arith.maxsi %41, %c0_i32_24 : i32
    %c63_i32_25 = arith.constant 63 : i32
    %43 = arith.minsi %42, %c63_i32_25 : i32
    %c5_i32 = arith.constant 5 : i32
    %c0_i32_26 = arith.constant 0 : i32
    %44 = tpu.memref_slice %arg2[%43, %c0_i32_26] : memref<64x128xf32, #tpu.memory_space<any>> -> memref<1x128xf32, #tpu.memory_space<any>>
    %c5_i32_27 = arith.constant 5 : i32
    %c0_i32_28 = arith.constant 0 : i32
    %45 = tpu.memref_slice %arg5[%c5_i32_27, %c0_i32_28] : memref<8x128xf32, #tpu.memory_space<vmem>> -> memref<1x128xf32, #tpu.memory_space<vmem>>
    %46 = tpu.memref_slice %arg6[%c5_i32] : memref<8x!tpu.dma_semaphore, #tpu.memory_space<semaphore_mem>> -> memref<1x!tpu.dma_semaphore, #tpu.memory_space<semaphore_mem>>
    %47 = tpu.memref_squeeze %46 : memref<1x!tpu.dma_semaphore, #tpu.memory_space<semaphore_mem>> -> memref<!tpu.dma_semaphore, #tpu.memory_space<semaphore_mem>>
    tpu.enqueue_dma source(%44 : memref<1x128xf32, #tpu.memory_space<any>>) target(%45 : memref<1x128xf32, #tpu.memory_space<vmem>>) target_semaphore(%47 : memref<!tpu.dma_semaphore, #tpu.memory_space<semaphore_mem>>)
    %48 = arith.index_cast %arg0 : i32 to index
    %c6 = arith.constant 6 : index
    %49 = memref.load %arg1[%48, %c6] : memref<2x8xi32, #tpu.memory_space<smem>>
    %c0_i32_29 = arith.constant 0 : i32
    %50 = arith.maxsi %49, %c0_i32_29 : i32
    %c63_i32_30 = arith.constant 63 : i32
    %51 = arith.minsi %50, %c63_i32_30 : i32
    %c6_i32 = arith.constant 6 : i32
    %c0_i32_31 = arith.constant 0 : i32
    %52 = tpu.memref_slice %arg2[%51, %c0_i32_31] : memref<64x128xf32, #tpu.memory_space<any>> -> memref<1x128xf32, #tpu.memory_space<any>>
    %c6_i32_32 = arith.constant 6 : i32
    %c0_i32_33 = arith.constant 0 : i32
    %53 = tpu.memref_slice %arg5[%c6_i32_32, %c0_i32_33] : memref<8x128xf32, #tpu.memory_space<vmem>> -> memref<1x128xf32, #tpu.memory_space<vmem>>
    %54 = tpu.memref_slice %arg6[%c6_i32] : memref<8x!tpu.dma_semaphore, #tpu.memory_space<semaphore_mem>> -> memref<1x!tpu.dma_semaphore, #tpu.memory_space<semaphore_mem>>
    %55 = tpu.memref_squeeze %54 : memref<1x!tpu.dma_semaphore, #tpu.memory_space<semaphore_mem>> -> memref<!tpu.dma_semaphore, #tpu.memory_space<semaphore_mem>>
    tpu.enqueue_dma source(%52 : memref<1x128xf32, #tpu.memory_space<any>>) target(%53 : memref<1x128xf32, #tpu.memory_space<vmem>>) target_semaphore(%55 : memref<!tpu.dma_semaphore, #tpu.memory_space<semaphore_mem>>)
    %56 = arith.index_cast %arg0 : i32 to index
    %c7 = arith.constant 7 : index
    %57 = memref.load %arg1[%56, %c7] : memref<2x8xi32, #tpu.memory_space<smem>>
    %c0_i32_34 = arith.constant 0 : i32
    %58 = arith.maxsi %57, %c0_i32_34 : i32
    %c63_i32_35 = arith.constant 63 : i32
    %59 = arith.minsi %58, %c63_i32_35 : i32
    %c7_i32 = arith.constant 7 : i32
    %c0_i32_36 = arith.constant 0 : i32
    %60 = tpu.memref_slice %arg2[%59, %c0_i32_36] : memref<64x128xf32, #tpu.memory_space<any>> -> memref<1x128xf32, #tpu.memory_space<any>>
    %c7_i32_37 = arith.constant 7 : i32
    %c0_i32_38 = arith.constant 0 : i32
    %61 = tpu.memref_slice %arg5[%c7_i32_37, %c0_i32_38] : memref<8x128xf32, #tpu.memory_space<vmem>> -> memref<1x128xf32, #tpu.memory_space<vmem>>
    %62 = tpu.memref_slice %arg6[%c7_i32] : memref<8x!tpu.dma_semaphore, #tpu.memory_space<semaphore_mem>> -> memref<1x!tpu.dma_semaphore, #tpu.memory_space<semaphore_mem>>
    %63 = tpu.memref_squeeze %62 : memref<1x!tpu.dma_semaphore, #tpu.memory_space<semaphore_mem>> -> memref<!tpu.dma_semaphore, #tpu.memory_space<semaphore_mem>>
    tpu.enqueue_dma source(%60 : memref<1x128xf32, #tpu.memory_space<any>>) target(%61 : memref<1x128xf32, #tpu.memory_space<vmem>>) target_semaphore(%63 : memref<!tpu.dma_semaphore, #tpu.memory_space<semaphore_mem>>)
    %c0_i32_39 = arith.constant 0 : i32
    %c0_i32_40 = arith.constant 0 : i32
    %c0_i32_41 = arith.constant 0 : i32
    %64 = tpu.memref_slice %arg2[%c0_i32_40, %c0_i32_41] : memref<64x128xf32, #tpu.memory_space<any>> -> memref<1x128xf32, #tpu.memory_space<any>>
    %c0_i32_42 = arith.constant 0 : i32
    %c0_i32_43 = arith.constant 0 : i32
    %65 = tpu.memref_slice %arg5[%c0_i32_42, %c0_i32_43] : memref<8x128xf32, #tpu.memory_space<vmem>> -> memref<1x128xf32, #tpu.memory_space<vmem>>
    %66 = tpu.memref_slice %arg6[%c0_i32_39] : memref<8x!tpu.dma_semaphore, #tpu.memory_space<semaphore_mem>> -> memref<1x!tpu.dma_semaphore, #tpu.memory_space<semaphore_mem>>
    %67 = tpu.memref_squeeze %66 : memref<1x!tpu.dma_semaphore, #tpu.memory_space<semaphore_mem>> -> memref<!tpu.dma_semaphore, #tpu.memory_space<semaphore_mem>>
    tpu.wait_dma2 semaphore(%67 : memref<!tpu.dma_semaphore, #tpu.memory_space<semaphore_mem>>) src(%64 : memref<1x128xf32, #tpu.memory_space<any>>) dst(%65 : memref<1x128xf32, #tpu.memory_space<vmem>>)
    %c1_i32_44 = arith.constant 1 : i32
    %c0_i32_45 = arith.constant 0 : i32
    %c0_i32_46 = arith.constant 0 : i32
    %68 = tpu.memref_slice %arg2[%c0_i32_45, %c0_i32_46] : memref<64x128xf32, #tpu.memory_space<any>> -> memref<1x128xf32, #tpu.memory_space<any>>
    %c1_i32_47 = arith.constant 1 : i32
    %c0_i32_48 = arith.constant 0 : i32
    %69 = tpu.memref_slice %arg5[%c1_i32_47, %c0_i32_48] : memref<8x128xf32, #tpu.memory_space<vmem>> -> memref<1x128xf32, #tpu.memory_space<vmem>>
    %70 = tpu.memref_slice %arg6[%c1_i32_44] : memref<8x!tpu.dma_semaphore, #tpu.memory_space<semaphore_mem>> -> memref<1x!tpu.dma_semaphore, #tpu.memory_space<semaphore_mem>>
    %71 = tpu.memref_squeeze %70 : memref<1x!tpu.dma_semaphore, #tpu.memory_space<semaphore_mem>> -> memref<!tpu.dma_semaphore, #tpu.memory_space<semaphore_mem>>
    tpu.wait_dma2 semaphore(%71 : memref<!tpu.dma_semaphore, #tpu.memory_space<semaphore_mem>>) src(%68 : memref<1x128xf32, #tpu.memory_space<any>>) dst(%69 : memref<1x128xf32, #tpu.memory_space<vmem>>)
    %c2_i32_49 = arith.constant 2 : i32
    %c0_i32_50 = arith.constant 0 : i32
    %c0_i32_51 = arith.constant 0 : i32
    %72 = tpu.memref_slice %arg2[%c0_i32_50, %c0_i32_51] : memref<64x128xf32, #tpu.memory_space<any>> -> memref<1x128xf32, #tpu.memory_space<any>>
    %c2_i32_52 = arith.constant 2 : i32
    %c0_i32_53 = arith.constant 0 : i32
    %73 = tpu.memref_slice %arg5[%c2_i32_52, %c0_i32_53] : memref<8x128xf32, #tpu.memory_space<vmem>> -> memref<1x128xf32, #tpu.memory_space<vmem>>
    %74 = tpu.memref_slice %arg6[%c2_i32_49] : memref<8x!tpu.dma_semaphore, #tpu.memory_space<semaphore_mem>> -> memref<1x!tpu.dma_semaphore, #tpu.memory_space<semaphore_mem>>
    %75 = tpu.memref_squeeze %74 : memref<1x!tpu.dma_semaphore, #tpu.memory_space<semaphore_mem>> -> memref<!tpu.dma_semaphore, #tpu.memory_space<semaphore_mem>>
    tpu.wait_dma2 semaphore(%75 : memref<!tpu.dma_semaphore, #tpu.memory_space<semaphore_mem>>) src(%72 : memref<1x128xf32, #tpu.memory_space<any>>) dst(%73 : memref<1x128xf32, #tpu.memory_space<vmem>>)
    %c3_i32_54 = arith.constant 3 : i32
    %c0_i32_55 = arith.constant 0 : i32
    %c0_i32_56 = arith.constant 0 : i32
    %76 = tpu.memref_slice %arg2[%c0_i32_55, %c0_i32_56] : memref<64x128xf32, #tpu.memory_space<any>> -> memref<1x128xf32, #tpu.memory_space<any>>
    %c3_i32_57 = arith.constant 3 : i32
    %c0_i32_58 = arith.constant 0 : i32
    %77 = tpu.memref_slice %arg5[%c3_i32_57, %c0_i32_58] : memref<8x128xf32, #tpu.memory_space<vmem>> -> memref<1x128xf32, #tpu.memory_space<vmem>>
    %78 = tpu.memref_slice %arg6[%c3_i32_54] : memref<8x!tpu.dma_semaphore, #tpu.memory_space<semaphore_mem>> -> memref<1x!tpu.dma_semaphore, #tpu.memory_space<semaphore_mem>>
    %79 = tpu.memref_squeeze %78 : memref<1x!tpu.dma_semaphore, #tpu.memory_space<semaphore_mem>> -> memref<!tpu.dma_semaphore, #tpu.memory_space<semaphore_mem>>
    tpu.wait_dma2 semaphore(%79 : memref<!tpu.dma_semaphore, #tpu.memory_space<semaphore_mem>>) src(%76 : memref<1x128xf32, #tpu.memory_space<any>>) dst(%77 : memref<1x128xf32, #tpu.memory_space<vmem>>)
    %c4_i32_59 = arith.constant 4 : i32
    %c0_i32_60 = arith.constant 0 : i32
    %c0_i32_61 = arith.constant 0 : i32
    %80 = tpu.memref_slice %arg2[%c0_i32_60, %c0_i32_61] : memref<64x128xf32, #tpu.memory_space<any>> -> memref<1x128xf32, #tpu.memory_space<any>>
    %c4_i32_62 = arith.constant 4 : i32
    %c0_i32_63 = arith.constant 0 : i32
    %81 = tpu.memref_slice %arg5[%c4_i32_62, %c0_i32_63] : memref<8x128xf32, #tpu.memory_space<vmem>> -> memref<1x128xf32, #tpu.memory_space<vmem>>
    %82 = tpu.memref_slice %arg6[%c4_i32_59] : memref<8x!tpu.dma_semaphore, #tpu.memory_space<semaphore_mem>> -> memref<1x!tpu.dma_semaphore, #tpu.memory_space<semaphore_mem>>
    %83 = tpu.memref_squeeze %82 : memref<1x!tpu.dma_semaphore, #tpu.memory_space<semaphore_mem>> -> memref<!tpu.dma_semaphore, #tpu.memory_space<semaphore_mem>>
    tpu.wait_dma2 semaphore(%83 : memref<!tpu.dma_semaphore, #tpu.memory_space<semaphore_mem>>) src(%80 : memref<1x128xf32, #tpu.memory_space<any>>) dst(%81 : memref<1x128xf32, #tpu.memory_space<vmem>>)
    %c5_i32_64 = arith.constant 5 : i32
    %c0_i32_65 = arith.constant 0 : i32
    %c0_i32_66 = arith.constant 0 : i32
    %84 = tpu.memref_slice %arg2[%c0_i32_65, %c0_i32_66] : memref<64x128xf32, #tpu.memory_space<any>> -> memref<1x128xf32, #tpu.memory_space<any>>
    %c5_i32_67 = arith.constant 5 : i32
    %c0_i32_68 = arith.constant 0 : i32
    %85 = tpu.memref_slice %arg5[%c5_i32_67, %c0_i32_68] : memref<8x128xf32, #tpu.memory_space<vmem>> -> memref<1x128xf32, #tpu.memory_space<vmem>>
    %86 = tpu.memref_slice %arg6[%c5_i32_64] : memref<8x!tpu.dma_semaphore, #tpu.memory_space<semaphore_mem>> -> memref<1x!tpu.dma_semaphore, #tpu.memory_space<semaphore_mem>>
    %87 = tpu.memref_squeeze %86 : memref<1x!tpu.dma_semaphore, #tpu.memory_space<semaphore_mem>> -> memref<!tpu.dma_semaphore, #tpu.memory_space<semaphore_mem>>
    tpu.wait_dma2 semaphore(%87 : memref<!tpu.dma_semaphore, #tpu.memory_space<semaphore_mem>>) src(%84 : memref<1x128xf32, #tpu.memory_space<any>>) dst(%85 : memref<1x128xf32, #tpu.memory_space<vmem>>)
    %c6_i32_69 = arith.constant 6 : i32
    %c0_i32_70 = arith.constant 0 : i32
    %c0_i32_71 = arith.constant 0 : i32
    %88 = tpu.memref_slice %arg2[%c0_i32_70, %c0_i32_71] : memref<64x128xf32, #tpu.memory_space<any>> -> memref<1x128xf32, #tpu.memory_space<any>>
    %c6_i32_72 = arith.constant 6 : i32
    %c0_i32_73 = arith.constant 0 : i32
    %89 = tpu.memref_slice %arg5[%c6_i32_72, %c0_i32_73] : memref<8x128xf32, #tpu.memory_space<vmem>> -> memref<1x128xf32, #tpu.memory_space<vmem>>
    %90 = tpu.memref_slice %arg6[%c6_i32_69] : memref<8x!tpu.dma_semaphore, #tpu.memory_space<semaphore_mem>> -> memref<1x!tpu.dma_semaphore, #tpu.memory_space<semaphore_mem>>
    %91 = tpu.memref_squeeze %90 : memref<1x!tpu.dma_semaphore, #tpu.memory_space<semaphore_mem>> -> memref<!tpu.dma_semaphore, #tpu.memory_space<semaphore_mem>>
    tpu.wait_dma2 semaphore(%91 : memref<!tpu.dma_semaphore, #tpu.memory_space<semaphore_mem>>) src(%88 : memref<1x128xf32, #tpu.memory_space<any>>) dst(%89 : memref<1x128xf32, #tpu.memory_space<vmem>>)
    %c7_i32_74 = arith.constant 7 : i32
    %c0_i32_75 = arith.constant 0 : i32
    %c0_i32_76 = arith.constant 0 : i32
    %92 = tpu.memref_slice %arg2[%c0_i32_75, %c0_i32_76] : memref<64x128xf32, #tpu.memory_space<any>> -> memref<1x128xf32, #tpu.memory_space<any>>
    %c7_i32_77 = arith.constant 7 : i32
    %c0_i32_78 = arith.constant 0 : i32
    %93 = tpu.memref_slice %arg5[%c7_i32_77, %c0_i32_78] : memref<8x128xf32, #tpu.memory_space<vmem>> -> memref<1x128xf32, #tpu.memory_space<vmem>>
    %94 = tpu.memref_slice %arg6[%c7_i32_74] : memref<8x!tpu.dma_semaphore, #tpu.memory_space<semaphore_mem>> -> memref<1x!tpu.dma_semaphore, #tpu.memory_space<semaphore_mem>>
    %95 = tpu.memref_squeeze %94 : memref<1x!tpu.dma_semaphore, #tpu.memory_space<semaphore_mem>> -> memref<!tpu.dma_semaphore, #tpu.memory_space<semaphore_mem>>
    tpu.wait_dma2 semaphore(%95 : memref<!tpu.dma_semaphore, #tpu.memory_space<semaphore_mem>>) src(%92 : memref<1x128xf32, #tpu.memory_space<any>>) dst(%93 : memref<1x128xf32, #tpu.memory_space<vmem>>)
    %c0_79 = arith.constant 0 : index
    %c0_80 = arith.constant 0 : index
    %96 = vector.load %arg5[%c0_79, %c0_80] : memref<8x128xf32, #tpu.memory_space<vmem>>, vector<8x128xf32>
    %c0_81 = arith.constant 0 : index
    %c0_82 = arith.constant 0 : index
    %97 = vector.load %arg3[%c0_81, %c0_82] : memref<16x128xf32, #tpu.memory_space<vmem>>, vector<8x128xf32>
    %98 = arith.addf %96, %97 : vector<8x128xf32>
    %c0_83 = arith.constant 0 : index
    %c0_84 = arith.constant 0 : index
    %c0_85 = arith.constant 0 : index
    %99 = vector.load %arg4[%c0_83, %c0_84, %c0_85] : memref<1x8x128xf32, #tpu.memory_space<vmem>>, vector<1x8x128xf32>
    %100 = vector.shape_cast %99 : vector<1x8x128xf32> to vector<8x128xf32>
    %101 = vector.shape_cast %98 : vector<8x128xf32> to vector<1x8x128xf32>
    tpu.vector_store %arg4[%c0_83, %c0_84, %c0_85], %101 {strides = array<i32>} : memref<1x8x128xf32, #tpu.memory_space<vmem>>, vector<1x8x128xf32>,
    return
  }
  func.func @transform_1(%arg0: i32, %arg1: memref<2x8xi32, #tpu.memory_space<smem>>) -> (i32, i32) {
    %c0_i32 = arith.constant 0 : i32
    %c0_i32_0 = arith.constant 0 : i32
    %c0_i32_1 = arith.constant 0 : i32
    return %c0_i32, %c0_i32_0 : i32, i32
  }
  func.func @transform_2(%arg0: i32, %arg1: memref<2x8xi32, #tpu.memory_space<smem>>) -> (i32, i32, i32) {
    %c0_i32 = arith.constant 0 : i32
    %c0_i32_0 = arith.constant 0 : i32
    %c0_i32_1 = arith.constant 0 : i32
    return %arg0, %c0_i32, %c0_i32_0 : i32, i32, i32
  }
}

</mosaic_0001>

<bundles_post_ra>
// kernel: learned_pos_word_embedding.1
= control target key start
LH: loop header
LB: loop body
LE: loop exit
PB: predicated region body
PF: predicated region fallthrough
CT: control target
= control target key end

     0   :  { %s1250_s0 = inlined_call_operand.hbm [shape: s32[2,8], index: 0, kind: input, shape index: {}]   ;;  %s1251_s1 = inlined_call_operand.hbm [shape: f32[64,128], index: 1, kind: input, shape index: {}]   ;;  %s1252_s2 = inlined_call_operand.hbm [shape: f32[16,128], index: 2, kind: input, shape index: {}]   ;;  %s1253_s3 = inlined_call_operand.hbm [shape: f32[2,8,128], index: 3, kind: output, shape index: {}]  }
   0x1   :  { %1258 = sst [smem:[#allocation39_spill]] %s1252_s2  ;;  %s591_s14 = scalar_lea.hbm %s1250_s0, 32 }
   0x2   :  { %p592_p0 = scmp.ne.s32.totalorder %s1250_s0, %s591_s14  ;;  %p595_p1 = scmp.lt.u32.totalorder %s591_s14, %s1250_s0 }
   0x4   :  { %p597_p2 = pnand %p595_p1, %p592_p0 }
   0x6   :  { %600 = shalt.err (!%p597_p2)  }
   0x7   :  { %s907_s19 = smov [#allocation5]  }
   0x8   :  { %9 = dma.hbm_to_smem %s1250_s0, 32, %s907_s19, [#allocation4] }
   0x9   :  { %865 = dma.done.wait [#allocation4], 32 }
   0xa   :  { %866 = vsyncadd [#allocation4], 4294967264 }
   0xb   :  { %11 = sfence }
   0xc   :  { %12 = vsyncpa [#allocation7], 0 }
   0xd   :  { %13 = vsyncpa [#allocation8], 0 }
   0xe   :  { %15 = vsyncpa [#allocation8 + $0x1], 0  ;;  %s952_s22 = smov 0   ;;  %s954_s23 = smov 0  }
   0xf   :  { %s956_s24 = smov 0   ;;  %s958_s25 = smov 0  }
  0x10 LB: > { %s973_s0 = sadd.s32 4294967295, %s905_s25   ;;  %s447_s26 = sadd.s32 4294967294, %s905_s25   ;;  %s905_s25 = sphi %s958_s25, %s1275_s25   ;;  %s901_s24 = sphi %s956_s24, %s1274_s24   ;;  %s897_s23 = sphi %s954_s23, %s1273_s23   ;;  %s893_s22 = sphi %s952_s22, %s1272_s22  }
  0x11   : > { %s977_s27 = sadd.s32 1, %s905_s25   ;;  %s49_s28 = sadd.s32 1, %s901_s24 }
  0x12   : > { %s46_s29 = ssub.s32 %s905_s25, %s977_s27  ;;  %p59_p3 = scmp.ne.s32.totalorder %s901_s24, %s897_s23 }
  0x13   : > { %p47_p4 = scmp.eq.s32.totalorder %s46_s29, 0  ;;  %p60_p5 = scmp.eq.s32.totalorder %s973_s0, 1 }
  0x14   : > { %p65_p6 = scmp.ne.s32.totalorder %s897_s23, %s893_s22  ;;  %p66_p7 = scmp.eq.s32.totalorder %s447_s26, 1 }
  0x15   : > { %s988_s30 = scalar_select %p47_p4, %s901_s24, %s49_s28  }
  0x16   : > { %p990_p8 = por %p60_p5, %p59_p3  ;;  %p994_p9 = por %p66_p7, %p65_p6 }
  0x17   : > { %p448_p10 = scmp.ge.s32.totalorder %s905_s25, 1  ;;  %p73_p11 = scmp.lt.s32.totalorder %s905_s25, 3 }
  0x18   : > { %s1259_s4 = scalar_select %p990_p8, 1, 0 }
  0x19   : > { %s1260_s5 = scalar_select %p994_p9, 1, 0 }
  0x1a   : > { %p1254_p12 = scmp.eq.s32.totalorder %s973_s0, 0  ;;  %p1001_p13 = pnand %p448_p10, %p73_p11 }
  0x1b   : > { %s908_s7 = smov [#allocation6]   ;;  %s1263_s2 = sld [smem:[#allocation39_spill]] }
  0x1c   : > { %s1261_s6 = scalar_select %p1001_p13, 1, 0 }
  0x1d   : > { %s85_s8 = sshll.u32 %s908_s7, 4  ;;  %p536_p0 = pneg %p1001_p13  ;;  %s86_s8 = int_to_ptr.vmem [resolvable:$true] %s85_s8 }
  0x1f   : > { %p1009_p1 = pnand %p1254_p12, %p536_p0 }
  0x21   : > { %s601_s12 = scalar_lea.hbm %s1263_s2, 256  ;;  %p603_p3 = pneg %p1009_p1 }
  0x22   : > { %p602_p2 = scmp.ne.s32.totalorder %s1263_s2, %s601_s12  ;;  %p608_p6 = scmp.lt.u32.totalorder %s601_s12, %s1263_s2 }
  0x24   : > { %p604_p4 = pnand %p603_p3, %p602_p2 }
  0x26   : > { %p605_p5 = pneg %p604_p4 }
  0x28   : > { %p610_p7 = pnand %p608_p6, %p605_p5 }
  0x2a   : > { %613 = shalt.err (!%p610_p7)
}
  0x2b   : > { %s614_s17 = scalar_lea.vmem %s86_s8, 256  ;;  %p622_p12 = scmp.lt.s32.totalorder %s86_s8, %s86_s8 }
  0x2c   : > { %p615_p10 = scmp.ne.s32.totalorder %s86_s8, %s614_s17  ;;  %p623_p9 = scmp.lt.s32.totalorder %s614_s17, %s614_s17 }
  0x2e   : > { %p617_p11 = pnand %p615_p10, %p603_p3  ;;  %p624_p8 = por %p623_p9, %p622_p12 }
  0x30   : > { %p618_p0 = pneg %p617_p11 }
  0x32   : > { %p625_p13 = pnand %p624_p8, %p618_p0 }
  0x34   : > { %628 = shalt.err (!%p625_p13)
}
  0x35   : > { %s909_s18 = smov 128   ;;  %s910_s19 = smov 8  }
  0x36   : > { %539 = dma.hbm_to_vmem [thread:$0]  (!%p1009_p1), %s1263_s2, 256, %s86_s8, [#allocation7], %s909_s18, %s909_s18, %s910_s19  }
  0x37   : > { %p1264_p2 = scmp.ne.s32.totalorder %s1261_s6, 0 }
  0x38   : > { %p1265_p4 = scmp.eq.s32.totalorder (!%p1264_p2), %s973_s0, 0 }
  0x39   : > { %101 = sbr.rel (%p1264_p2) target bundleno = 315 (0x13b), region = 24 }
  0x40   : > { %868 = dma.done.wait (%p1265_p4), [#allocation7], 256   ;;  %p1266_p3 = pmov %p1265_p4 }
  0x41   : > { %s1257_s26 = sand.u32 1, %s897_s23   ;;  %s1037_s28 = sshll.u32 %s973_s0, 7 }
  0x42   : > { %870 = vsyncadd (%p1266_p3), [#allocation7], 4294967040  ;;  %s1041_s29 = sshll.u32 %s1257_s26, 3  ;;  %s117_s6 = sld [smem:[#allocation5 + %s1037_s28]] }
  0x43   : > { %s911_s7 = smov [#allocation2]   ;;  %s135_s9 = sadd.s32 1, %s1037_s28 }
  0x44   : > { %s131_s8 = sshll.u32 %s911_s7, 4  ;;  %s1047_s10 = sld [smem:[#allocation5 + %s135_s9]]  ;;  %s1045_s8 = int_to_ptr.vmem [resolvable:$true] %s131_s8 }
  0x45   : > { %s156_s11 = sadd.s32 2, %s1037_s28  ;;  %s912_s0 = smov [#allocation2 + $0x1]  }
  0x46   : > { %s152_s12 = sshll.u32 %s912_s0, 4  ;;  %s1050_s13 = sld [smem:[#allocation5 + %s156_s11]]  ;;  %s1052_s12 = int_to_ptr.vmem [resolvable:$true] %s152_s12 }
  0x47   : > { %s1065_s7 = scalar_lea.hbm %s1251_s1, 1024 }
  0x48   : > { %p118_p8 = scmp.gt.s32.totalorder %s117_s6, 0  ;;  %p454_p9 = scmp.lt.s32.totalorder %s117_s6, 63 }
  0x4a   : > { %s1277_s6 = smov (!%p118_p8, %s117_s6), 0  ;;  %p137_p12 = scmp.gt.s32.totalorder %s1047_s10, 0 }
  0x4b   : > { %p460_p13 = scmp.lt.s32.totalorder %s1047_s10, 63  ;;  %s1279_s6 = smov (!%p454_p9, %s1277_s6), 63 }
  0x4c   : > { %s138_s14 = scalar_select %p137_p12, %s1047_s10, 0 }
  0x4d   : > { %s459_s15 = sshll.u32 %s1279_s6, 4  ;;  %p158_p1 = scmp.gt.s32.totalorder %s1050_s13, 0 }
  0x4e   : > { %s123_s18 = scalar_lea.hbm %s1251_s1, %s459_s15 }
  0x4f   : > { %s629_s19 = scalar_lea.hbm %s123_s18, 16  ;;  %p632_p7 = scmp.lt.u32.totalorder %s123_s18, %s1251_s1 }
  0x50   : > { %p630_p6 = scmp.ne.s32.totalorder %s123_s18, %s629_s19  ;;  %p633_p10 = scmp.lt.u32.totalorder %s1065_s7, %s629_s19 }
  0x51   : > { %p635_p0 = scmp.lt.u32.totalorder %s629_s19, %s123_s18 }
  0x52   : > { %p634_p11 = por %p633_p10, %p632_p7 }
  0x54   : > { %p636_p2 = por %p635_p0, %p634_p11 }
  0x56   : > { %p637_p4 = pnand %p636_p2, %p630_p6 }
  0x58   : > { %640 = shalt.err (!%p637_p4)  }
  0x59   : > { %s641_s6 = scalar_lea.vmem %s1045_s8, 16  ;;  %s1074_s0 = scalar_lea.vmem %s1045_s8, 128 }
  0x5a   : > { %p642_p3 = scmp.ne.s32.totalorder %s1045_s8, %s641_s6  ;;  %p646_p8 = scmp.lt.s32.totalorder %s1045_s8, %s1045_s8 }
  0x5b   : > { %p647_p9 = scmp.lt.s32.totalorder %s1074_s0, %s641_s6 }
  0x5d   : > { %p648_p12 = por %p647_p9, %p646_p8 }
  0x5f   : > { %p649_p5 = pnand %p648_p12, %p642_p3 }
  0x61   : > { %652 = shalt.err (!%p649_p5)  }
  0x62   : > { %134 = dma.hbm_to_vmem [thread:$0]  %s123_s18, 16, %s1045_s8, [#allocation3] }
  0x63   : > { %s1281_s14 = smov (!%p460_p13, %s138_s14), 63  ;;  %s913_s17 = smov [#allocation2 + $0x2]  }
  0x64   : > { %s159_s15 = scalar_select %p158_p1, %s1050_s13, 0 }
  0x65   : > { %s465_s16 = sshll.u32 %s1281_s14, 4  ;;  %s173_s19 = sshll.u32 %s913_s17, 4  ;;  %s1088_s19 = int_to_ptr.vmem [resolvable:$true] %s173_s19 }
  0x66   : > { %s142_s9 = scalar_lea.hbm %s1251_s1, %s465_s16 }
  0x67   : > { %s653_s11 = scalar_lea.hbm %s142_s9, 16  ;;  %p656_p6 = scmp.lt.u32.totalorder %s142_s9, %s1251_s1 }
  0x68   : > { %p654_p5 = scmp.ne.s32.totalorder %s142_s9, %s653_s11  ;;  %p657_p7 = scmp.lt.u32.totalorder %s1065_s7, %s653_s11 }
  0x69   : > { %p659_p13 = scmp.lt.u32.totalorder %s653_s11, %s142_s9 }
  0x6a   : > { %p658_p10 = por %p657_p7, %p656_p6 }
  0x6c   : > { %p660_p11 = por %p659_p13, %p658_p10 }
  0x6e   : > { %p661_p1 = pnand %p660_p11, %p654_p5 }
  0x70   : > { %664 = shalt.err (!%p661_p1)  }
  0x71   : > { %s665_s10 = scalar_lea.vmem %s1052_s12, 16  ;;  %p670_p2 = scmp.lt.s32.totalorder %s1052_s12, %s1045_s8 }
  0x72   : > { %p666_p0 = scmp.ne.s32.totalorder %s1052_s12, %s665_s10  ;;  %p671_p4 = scmp.lt.s32.totalorder %s1074_s0, %s665_s10 }
  0x74   : > { %p672_p3 = por %p671_p4, %p670_p2 }
  0x76   : > { %p673_p8 = pnand %p672_p3, %p666_p0 }
  0x78   : > { %676 = shalt.err (!%p673_p8)  }
  0x79   : > { %155 = dma.hbm_to_vmem [thread:$0]  %s142_s9, 16, %s1052_s12, [#allocation3 + $0x1] }
  0x7a   : > { %p1267_p9 = scmp.lt.s32.totalorder %s1050_s13, 63  ;;  %s177_s26 = sadd.s32 3, %s1037_s28 }
  0x7b   : > { %s1103_s18 = sld [smem:[#allocation5 + %s177_s26]] }
  0x7c   : > { %s1283_s15 = smov (!%p1267_p9, %s159_s15), 63 }
  0x7d   : > { %s471_s14 = sshll.u32 %s1283_s15, 4 }
  0x7e   : > { %s163_s20 = scalar_lea.hbm %s1251_s1, %s471_s14 }
  0x7f   : > { %s677_s21 = scalar_lea.hbm %s163_s20, 16  ;;  %p680_p5 = scmp.lt.u32.totalorder %s163_s20, %s1251_s1 }
  0x80   : > { %p678_p12 = scmp.ne.s32.totalorder %s163_s20, %s677_s21  ;;  %p681_p6 = scmp.lt.u32.totalorder %s1065_s7, %s677_s21 }
  0x81   : > { %p683_p10 = scmp.lt.u32.totalorder %s677_s21, %s163_s20 }
  0x82   : > { %p682_p7 = por %p681_p6, %p680_p5 }
  0x84   : > { %p684_p13 = por %p683_p10, %p682_p7 }
  0x86   : > { %p685_p11 = pnand %p684_p13, %p678_p12 }
  0x88   : > { %688 = shalt.err (!%p685_p11)  }
  0x89   : > { %s689_s12 = scalar_lea.vmem %s1088_s19, 16  ;;  %p694_p0 = scmp.lt.s32.totalorder %s1088_s19, %s1045_s8 }
  0x8a   : > { %p690_p1 = scmp.ne.s32.totalorder %s1088_s19, %s689_s12  ;;  %p695_p2 = scmp.lt.s32.totalorder %s1074_s0, %s689_s12 }
  0x8c   : > { %p696_p4 = por %p695_p2, %p694_p0 }
  0x8e   : > { %p697_p3 = pnand %p696_p4, %p690_p1 }
  0x90   : > { %700 = shalt.err (!%p697_p3)  }
  0x91   : > { %176 = dma.hbm_to_vmem [thread:$0]  %s163_s20, 16, %s1088_s19, [#allocation3 + $0x2] }
  0x92   : > { %s914_s13 = smov [#allocation2 + $0x3]   ;;  %s198_s9 = sadd.s32 4, %s1037_s28 }
  0x93   : > { %s194_s15 = sshll.u32 %s914_s13, 4  ;;  %s1119_s10 = sld [smem:[#allocation5 + %s198_s9]]  ;;  %s195_s15 = int_to_ptr.vmem [resolvable:$true] %s194_s15 }
  0x94   : > { %s915_s26 = smov [#allocation2 + $0x4]   ;;  %s219_s16 = sadd.s32 5, %s1037_s28 }
  0x95   : > { %s215_s14 = sshll.u32 %s915_s26, 4  ;;  %p179_p8 = scmp.gt.s32.totalorder %s1103_s18, 0  ;;  %s1127_s14 = int_to_ptr.vmem [resolvable:$true] %s215_s14 }
  0x96   : > { %p472_p9 = scmp.lt.s32.totalorder %s1103_s18, 63  ;;  %s1124_s17 = sld [smem:[#allocation5 + %s219_s16]] }
  0x97   : > { %s1285_s18 = smov (!%p179_p8, %s1103_s18), 0  ;;  %s240_s19 = sadd.s32 6, %s1037_s28 }
  0x98   : > { %s1287_s18 = smov (!%p472_p9, %s1285_s18), 63 }
  0x99   : > { %p200_p12 = scmp.gt.s32.totalorder %s1119_s10, 0  ;;  %s477_s20 = sshll.u32 %s1287_s18, 4 }
  0x9a   : > { %s184_s6 = scalar_lea.hbm %s1251_s1, %s477_s20 }
  0x9b   : > { %s701_s12 = scalar_lea.hbm %s184_s6, 16  ;;  %p704_p10 = scmp.lt.u32.totalorder %s184_s6, %s1251_s1 }
  0x9c   : > { %p221_p6 = scmp.gt.s32.totalorder %s1124_s17, 0  ;;  %p702_p7 = scmp.ne.s32.totalorder %s184_s6, %s701_s12 }
  0x9d   : > { %p705_p13 = scmp.lt.u32.totalorder %s1065_s7, %s701_s12  ;;  %p707_p1 = scmp.lt.u32.totalorder %s701_s12, %s184_s6 }
  0x9f   : > { %p706_p11 = por %p705_p13, %p704_p10 }
  0xa1   : > { %p708_p0 = por %p707_p1, %p706_p11 }
  0xa3   : > { %p709_p2 = pnand %p708_p0, %p702_p7 }
  0xa5   : > { %712 = shalt.err (!%p709_p2)  }
  0xa6   : > { %s713_s26 = scalar_lea.vmem %s195_s15, 16  ;;  %p718_p3 = scmp.lt.s32.totalorder %s195_s15, %s1045_s8 }
  0xa7   : > { %p714_p4 = scmp.ne.s32.totalorder %s195_s15, %s713_s26  ;;  %p719_p8 = scmp.lt.s32.totalorder %s1074_s0, %s713_s26 }
  0xa9   : > { %p720_p9 = por %p719_p8, %p718_p3 }
  0xab   : > { %p721_p5 = pnand %p720_p9, %p714_p4 }
  0xad   : > { %724 = shalt.err (!%p721_p5)  }
  0xae   : > { %197 = dma.hbm_to_vmem [thread:$0]  %s184_s6, 16, %s195_s15, [#allocation3 + $0x3] }
  0xaf   : > { %s201_s18 = scalar_select %p200_p12, %s1119_s10, 0 }
  0xb0   : > { %s222_s16 = scalar_select %p221_p6, %s1124_s17, 0 }
  0xb1   : > { %p1268_p7 = scmp.lt.s32.totalorder %s1119_s10, 63  ;;  %p484_p10 = scmp.lt.s32.totalorder %s1124_s17, 63 }
  0xb2   : > { %s916_s20 = smov [#allocation2 + $0x5]   ;;  %s1151_s12 = sld [smem:[#allocation5 + %s240_s19]] }
  0xb3   : > { %s1289_s18 = smov (!%p1268_p7, %s201_s18), 63  ;;  %s236_s21 = sshll.u32 %s916_s20, 4  ;;  %s237_s21 = int_to_ptr.vmem [resolvable:$true] %s236_s21 }
  0xb4   : > { %s483_s11 = sshll.u32 %s1289_s18, 4 }
  0xb5   : > { %s205_s13 = scalar_lea.hbm %s1251_s1, %s483_s11 }
  0xb6   : > { %s725_s9 = scalar_lea.hbm %s205_s13, 16  ;;  %p728_p12 = scmp.lt.u32.totalorder %s205_s13, %s1251_s1 }
  0xb7   : > { %p726_p5 = scmp.ne.s32.totalorder %s205_s13, %s725_s9  ;;  %p729_p13 = scmp.lt.u32.totalorder %s1065_s7, %s725_s9 }
  0xb8   : > { %p731_p11 = scmp.lt.u32.totalorder %s725_s9, %s205_s13 }
  0xb9   : > { %p730_p6 = por %p729_p13, %p728_p12 }
  0xbb   : > { %p732_p1 = por %p731_p11, %p730_p6 }
  0xbd   : > { %p733_p0 = pnand %p732_p1, %p726_p5 }
  0xbf   : > { %736 = shalt.err (!%p733_p0)  }
  0xc0   : > { %s737_s10 = scalar_lea.vmem %s1127_s14, 16  ;;  %p742_p4 = scmp.lt.s32.totalorder %s1127_s14, %s1045_s8 }
  0xc1   : > { %p738_p2 = scmp.ne.s32.totalorder %s1127_s14, %s737_s10  ;;  %p743_p3 = scmp.lt.s32.totalorder %s1074_s0, %s737_s10 }
  0xc3   : > { %p744_p8 = por %p743_p3, %p742_p4 }
  0xc5   : > { %p745_p9 = pnand %p744_p8, %p738_p2 }
  0xc7   : > { %748 = shalt.err (!%p745_p9)  }
  0xc8   : > { %218 = dma.hbm_to_vmem [thread:$0]  %s205_s13, 16, %s1127_s14, [#allocation3 + $0x4] }
  0xc9   : > { %s1291_s16 = smov (!%p484_p10, %s222_s16), 63  ;;  %s917_s2 = smov [#allocation2 + $0x6]  }
  0xca   : > { %s257_s19 = sshll.u32 %s917_s2, 4  ;;  %s489_s18 = sshll.u32 %s1291_s16, 4  ;;  %s258_s19 = int_to_ptr.vmem [resolvable:$true] %s257_s19 }
  0xcb   : > { %s261_s20 = sadd.s32 7, %s1037_s28  ;;  %s226_s6 = scalar_lea.hbm %s1251_s1, %s489_s18 }
  0xcc   : > { %p242_p7 = scmp.gt.s32.totalorder %s1151_s12, 0  ;;  %s749_s9 = scalar_lea.hbm %s226_s6, 16 }
  0xcd   : > { %p750_p5 = scmp.ne.s32.totalorder %s226_s6, %s749_s9  ;;  %p752_p12 = scmp.lt.u32.totalorder %s226_s6, %s1251_s1 }
  0xce   : > { %p753_p13 = scmp.lt.u32.totalorder %s1065_s7, %s749_s9  ;;  %p755_p11 = scmp.lt.u32.totalorder %s749_s9, %s226_s6 }
  0xd0   : > { %p754_p6 = por %p753_p13, %p752_p12 }
  0xd2   : > { %p756_p10 = por %p755_p11, %p754_p6 }
  0xd4   : > { %p757_p1 = pnand %p756_p10, %p750_p5 }
  0xd6   : > { %760 = shalt.err (!%p757_p1)  }
  0xd7   : > { %s761_s14 = scalar_lea.vmem %s237_s21, 16  ;;  %p766_p2 = scmp.lt.s32.totalorder %s237_s21, %s1045_s8 }
  0xd8   : > { %p762_p0 = scmp.ne.s32.totalorder %s237_s21, %s761_s14  ;;  %p767_p4 = scmp.lt.s32.totalorder %s1074_s0, %s761_s14 }
  0xda   : > { %p768_p3 = por %p767_p4, %p766_p2 }
  0xdc   : > { %p769_p8 = pnand %p768_p3, %p762_p0 }
  0xde   : > { %772 = shalt.err (!%p769_p8)  }
  0xdf   : > { %239 = dma.hbm_to_vmem [thread:$0]  %s226_s6, 16, %s237_s21, [#allocation3 + $0x5] }
  0xe0   : > { %s243_s17 = scalar_select %p242_p7, %s1151_s12, 0 }
  0xe1   : > { %p490_p9 = scmp.lt.s32.totalorder %s1151_s12, 63  ;;  %s262_s16 = sld [smem:[#allocation5 + %s261_s20]] }
  0xe3   : > { %s1293_s17 = smov (!%p490_p9, %s243_s17), 63 }
  0xe4   : > { %s495_s13 = sshll.u32 %s1293_s17, 4 }
  0xe5   : > { %s247_s11 = scalar_lea.hbm %s1251_s1, %s495_s13 }
  0xe6   : > { %s773_s15 = scalar_lea.hbm %s247_s11, 16  ;;  %p776_p12 = scmp.lt.u32.totalorder %s247_s11, %s1251_s1 }
  0xe7   : > { %p774_p5 = scmp.ne.s32.totalorder %s247_s11, %s773_s15  ;;  %p777_p13 = scmp.lt.u32.totalorder %s1065_s7, %s773_s15 }
  0xe8   : > { %p779_p11 = scmp.lt.u32.totalorder %s773_s15, %s247_s11 }
  0xe9   : > { %p778_p6 = por %p777_p13, %p776_p12 }
  0xeb   : > { %p780_p10 = por %p779_p11, %p778_p6 }
  0xed   : > { %p781_p7 = pnand %p780_p10, %p774_p5 }
  0xef   : > { %784 = shalt.err (!%p781_p7)  }
  0xf0   : > { %s785_s21 = scalar_lea.vmem %s258_s19, 16  ;;  %p790_p0 = scmp.lt.s32.totalorder %s258_s19, %s1045_s8 }
  0xf1   : > { %p786_p1 = scmp.ne.s32.totalorder %s258_s19, %s785_s21  ;;  %p791_p2 = scmp.lt.s32.totalorder %s1074_s0, %s785_s21 }
  0xf3   : > { %p792_p4 = por %p791_p2, %p790_p0 }
  0xf5   : > { %p793_p3 = pnand %p792_p4, %p786_p1 }
  0xf7   : > { %796 = shalt.err (!%p793_p3)  }
  0xf8   : > { %260 = dma.hbm_to_vmem [thread:$0]  %s247_s11, 16, %s258_s19, [#allocation3 + $0x6] }
  0xf9   : > { %p263_p8 = scmp.gt.s32.totalorder %s262_s16, 0  ;;  %p496_p9 = scmp.lt.s32.totalorder %s262_s16, 63 }
  0xfa   : > { %s918_s12 = smov [#allocation2 + $0x7]  }
  0xfb   : > { %s278_s20 = sshll.u32 %s918_s12, 4  ;;  %s1295_s16 = smov (!%p263_p8, %s262_s16), 0  ;;  %s279_s20 = int_to_ptr.vmem [resolvable:$true] %s278_s20 }
  0xfc   : > { %s1297_s16 = smov (!%p496_p9, %s1295_s16), 63 }
  0xfd   : > { %s501_s6 = sshll.u32 %s1297_s16, 4 }
  0xfe   : > { %s268_s17 = scalar_lea.hbm %s1251_s1, %s501_s6 }
  0xff   : > { %s797_s13 = scalar_lea.hbm %s268_s17, 16  ;;  %p800_p12 = scmp.lt.u32.totalorder %s268_s17, %s1251_s1 }
 0x100   : > { %p798_p5 = scmp.ne.s32.totalorder %s268_s17, %s797_s13  ;;  %p801_p13 = scmp.lt.u32.totalorder %s1065_s7, %s797_s13 }
 0x101   : > { %p803_p11 = scmp.lt.u32.totalorder %s797_s13, %s268_s17 }
 0x102   : > { %p802_p6 = por %p801_p13, %p800_p12 }
 0x104   : > { %p804_p10 = por %p803_p11, %p802_p6 }
 0x106   : > { %p805_p7 = pnand %p804_p10, %p798_p5 }
 0x108   : > { %808 = shalt.err (!%p805_p7)  }
 0x109   : > { %s809_s19 = scalar_lea.vmem %s279_s20, 16  ;;  %p814_p0 = scmp.lt.s32.totalorder %s279_s20, %s1045_s8 }
 0x10a   : > { %p810_p1 = scmp.ne.s32.totalorder %s279_s20, %s809_s19  ;;  %p815_p2 = scmp.lt.s32.totalorder %s1074_s0, %s809_s19 }
 0x10c   : > { %p816_p4 = por %p815_p2, %p814_p0 }
 0x10e   : > { %p817_p3 = pnand %p816_p4, %p810_p1 }
 0x110   : > { %820 = shalt.err (!%p817_p3)  }
 0x111   : > { %281 = dma.hbm_to_vmem [thread:$0]  %s268_s17, 16, %s279_s20, [#allocation3 + $0x7] }
 0x112   : > { %s115_s16 = scalar_lea.vmem [#allocation9], %s1041_s29 }
 0x113   : > { %871 = dma.done.wait [#allocation3], 16 }
 0x114   : > { %872 = vsyncadd [#allocation3], 4294967280 }
 0x115   : > { %873 = dma.done.wait [#allocation3 + $0x1], 16 }
 0x116   : > { %874 = vsyncadd [#allocation3 + $0x1], 4294967280 }
 0x117   : > { %875 = dma.done.wait [#allocation3 + $0x2], 16 }
 0x118   : > { %876 = vsyncadd [#allocation3 + $0x2], 4294967280 }
 0x119   : > { %877 = dma.done.wait [#allocation3 + $0x3], 16 }
 0x11a   : > { %878 = vsyncadd [#allocation3 + $0x3], 4294967280 }
 0x11b   : > { %879 = dma.done.wait [#allocation3 + $0x4], 16 }
 0x11c   : > { %880 = vsyncadd [#allocation3 + $0x4], 4294967280 }
 0x11d   : > { %881 = dma.done.wait [#allocation3 + $0x5], 16 }
 0x11e   : > { %882 = vsyncadd [#allocation3 + $0x5], 4294967280 }
 0x11f   : > { %883 = dma.done.wait [#allocation3 + $0x6], 16 }
 0x120   : > { %884 = vsyncadd [#allocation3 + $0x6], 4294967280 }
 0x121   : > { %885 = dma.done.wait [#allocation3 + $0x7], 16 }
 0x122   : > { %886 = vsyncadd [#allocation3 + $0x7], 4294967280  ;;  %s317_s29 = sshll.u32 %s115_s16, 4  ;;  %v299_v0 = vld [vmem:[#allocation2] sm:$0xff]  ;;  %v300_v1 = vld [vmem:[#allocation6] sm:$0xff]  ;;  %s1206_s0 = scalar_lea.hbm %s1253_s3, %s1037_s28  ;;  %s1208_s29 = int_to_ptr.vmem [resolvable:$true] %s317_s29 }
 0x123   : > { %v301_v2 = vadd.f32 %v300_v1, %v299_v0  ;;  %s1269_s11 = sand.u32 1, %s897_s23   ;;  %s821_s9 = scalar_lea.vmem %s1208_s29, 128 }
 0x124   : > { %s304_s15 = scalar_lea.sflag [#allocation8], %s1269_s11  ;;  %p822_p8 = scmp.ne.s32.totalorder %s1208_s29, %s821_s9 }
 0x125   : > { %302 = vst [vmem:[%s115_s16] sm:$0xff] %v301_v2  ;;  %p1270_p9 = scmp.ne.s32.totalorder %s1259_s4, 0  ;;  %s919_s26 = smov [#allocation9]  }
 0x126   : > { %s825_s21 = sshll.u32 %s919_s26, 4  ;;  %s826_s21 = int_to_ptr.vmem [resolvable:$false] %s825_s21 }
 0x127   : > { %p823_p5 = pnand %p822_p8, %p1270_p9  ;;  %s827_s12 = scalar_lea.vmem %s826_s21, 256 }
 0x128   : > { %p828_p13 = scmp.lt.s32.totalorder %s1208_s29, %s826_s21  ;;  %p829_p6 = scmp.lt.s32.totalorder %s827_s12, %s821_s9 }
 0x129   : > { %p824_p12 = pneg %p823_p5 }
 0x12a   : > { %p830_p11 = por %p829_p6, %p828_p13 }
 0x12c   : > { %p831_p10 = pnand %p830_p11, %p824_p12 }
 0x12e   : > { %834 = shalt.err (!%p831_p10)
}
 0x12f   : > { %s835_s28 = scalar_lea.hbm %s1206_s0, 128  ;;  %s839_s10 = scalar_lea.hbm %s1253_s3, 256 }
 0x130   : > { %p836_p7 = scmp.ne.s32.totalorder %s1206_s0, %s835_s28  ;;  %p840_p2 = scmp.lt.u32.totalorder %s1206_s0, %s1253_s3 }
 0x131   : > { %p841_p4 = scmp.lt.u32.totalorder %s839_s10, %s835_s28  ;;  %p843_p8 = scmp.lt.u32.totalorder %s835_s28, %s1206_s0 }
 0x132   : > { %p837_p1 = pnand %p836_p7, %p1270_p9 }
 0x133   : > { %p842_p3 = por %p841_p4, %p840_p2 }
 0x134   : > { %p838_p0 = pneg %p837_p1 }
 0x135   : > { %p844_p5 = por %p843_p8, %p842_p3 }
 0x137   : > { %p845_p12 = pnand %p844_p5, %p838_p0 }
 0x139   : > { %848 = shalt.err (!%p845_p12)
}
 0x13a   : > { %534 = dma.vmem_to_hbm [thread:$0]  (%p1270_p9), %s1208_s29, 128, %s1206_s0, %s304_s15  }
 0x13b PF: > { %p546_p13 = scmp.ge.s32.totalorder %s905_s25, 2  ;;  %s329_s13 = sand.u32 1, %s893_s22  }
 0x13c   : > { %p1271_p6 = scmp.ne.s32.totalorder %s1260_s5, 0  ;;  %s330_s2 = scalar_lea.sflag [#allocation8], %s329_s13 }
 0x13e   : > { %p541_p11 = pnand %p546_p13, %p1271_p6 }
 0x140   : > { %888 = dma.done.wait (!%p541_p11), %s330_s2, 128  }
 0x141   : > { %890 = vsyncadd (!%p541_p11), %s330_s2, 4294967168  ;;  %p18_p10 = scmp.ge.s32.totalorder %s977_s27, 4   ;;  %s1272_s22 = smov %s897_s23 }
 0x142   : > { %s1273_s23 = smov %s901_s24  ;;  %s1274_s24 = smov %s988_s30 }
 0x143   : > { %s1275_s25 = smov %s977_s27  ;;  %20 = sbr.rel (!%p18_p10) target bundleno = 16 (0x10), region = 122 }
 0x14a   :  { %335 = vsyncpa [#allocation7], 1 }
 0x14b   :  { %337 = vsyncpa [#allocation7 + $0x1], 1 }
 0x14c   :  { %338 = vsyncpa [#allocation8], 1 }
 0x14d   :  { %340 = vsyncpa [#allocation8 + $0x1], 1 }
 0x14e   :  { %341 = vsyncmov [#allocation3] }
 0x151   :  { %s342_s25 = vpop.sfrf %341 }
 0x152   :  { %p506_p9 = scmp.ne.s32.totalorder %s342_s25, 0 }
 0x154   :  { %346 = shalt.err (%p506_p9)  }
 0x155   :  { %348 = vsyncmov [#allocation3 + $0x1] }
 0x158   :  { %s349_s4 = vpop.sfrf %348 }
 0x159   :  { %p507_p7 = scmp.ne.s32.totalorder %s349_s4, 0 }
 0x15b   :  { %353 = shalt.err (%p507_p7)  }
 0x15c   :  { %355 = vsyncmov [#allocation3 + $0x2] }
 0x15f   :  { %s356_s5 = vpop.sfrf %355 }
 0x160   :  { %p508_p1 = scmp.ne.s32.totalorder %s356_s5, 0 }
 0x162   :  { %360 = shalt.err (%p508_p1)  }
 0x163   :  { %362 = vsyncmov [#allocation3 + $0x3] }
 0x166   :  { %s363_s30 = vpop.sfrf %362 }
 0x167   :  { %p509_p0 = scmp.ne.s32.totalorder %s363_s30, 0 }
 0x169   :  { %367 = shalt.err (%p509_p0)  }
 0x16a   :  { %369 = vsyncmov [#allocation3 + $0x4] }
 0x16d   :  { %s370_s1 = vpop.sfrf %369 }
 0x16e   :  { %p510_p2 = scmp.ne.s32.totalorder %s370_s1, 0 }
 0x170   :  { %374 = shalt.err (%p510_p2)  }
 0x171   :  { %376 = vsyncmov [#allocation3 + $0x5] }
 0x174   :  { %s377_s3 = vpop.sfrf %376 }
 0x175   :  { %p511_p4 = scmp.ne.s32.totalorder %s377_s3, 0 }
 0x177   :  { %381 = shalt.err (%p511_p4)  }
 0x178   :  { %383 = vsyncmov [#allocation3 + $0x6] }
 0x17b   :  { %s384_s22 = vpop.sfrf %383 }
 0x17c   :  { %p512_p3 = scmp.ne.s32.totalorder %s384_s22, 0 }
 0x17e   :  { %388 = shalt.err (%p512_p3)  }
 0x17f   :  { %390 = vsyncmov [#allocation3 + $0x7] }
 0x182   :  { %s391_s23 = vpop.sfrf %390 }
 0x183   :  { %p513_p8 = scmp.ne.s32.totalorder %s391_s23, 0 }
 0x185   :  { %395 = shalt.err (%p513_p8)  }

</bundles_post_ra>
